<compile_context>
chip_gen: v5e
topology: v5e:2x2
jax: 0.10.0
libtpu: 0.0.40
codegen_flags: <defaults>
</compile_context>

<pallas_src>
import functools

import jax
import jax.numpy as jnp
from jax.experimental import pallas as pl
from jax.experimental.pallas import tpu as pltpu


# --------------------------------------------------------------------------- kernel

def _rmsnorm_kernel(x_ref, scale_ref, o_ref, *, eps):
    # x_ref:     (tR, H) input tile (any float dtype; compute in f32)
    # scale_ref: (1, H)  precomputed (1 + weight) in f32, shared across grid steps
    # o_ref:     (tR, H) output tile, same dtype as x
    x = x_ref[...].astype(jnp.float32)                  # VPU upcast
    ms = jnp.mean(x * x, axis=-1, keepdims=True)        # (tR, 1) cross-lane reduce (XLU)
    inv = jax.lax.rsqrt(ms + eps)                       # EUP
    o_ref[...] = (x * inv * scale_ref[...]).astype(o_ref.dtype)


# ------------------------------------------------------------------- tile selection

def _tpu_generation():
    try:
        kind = jax.devices()[0].device_kind.lower()
    except Exception:
        return "unknown"
    if "v7" in kind:
        return "v7x"
    if "v6" in kind:
        return "v6e"
    if "v5e" in kind or "v5 lite" in kind or "v5litepod" in kind:
        return "v5e"
    return "unknown"


# Per generation: (target in+out HBM bytes per grid step, scoped-VMEM limit, min grid steps)
_GEN_PARAMS = {
    # v7x: 3.2 TB/s HBM -> need bigger steps to hide the ~0.35us fixed cost;
    #      64 MiB physical VMEM per TC, so cap the scoped limit at 48 MiB; 2 TCs.
    "v7x":     (16 * 1024 * 1024, 48 * 1024 * 1024, 2),
    # v6e: 128 MiB physical VMEM, ~1.4 TB/s HBM.
    "v6e":     (8 * 1024 * 1024, 64 * 1024 * 1024, 1),
    # v5e: ~0.82 TB/s HBM -> 2 MiB f32 input tiles are already <8% overhead; keep
    #      the scoped limit modest (default is only 16 MiB).
    "v5e":     (4 * 1024 * 1024, 32 * 1024 * 1024, 1),
    "unknown": (4 * 1024 * 1024, 32 * 1024 * 1024, 1),
}

_MAX_BLOCK_ROWS = 16384


def _sublane_pack(itemsize):
    # Native sublane packing: f32 -> 8, bf16/f16 -> 16, int8/fp8 -> 32.
    return {4: 8, 2: 16, 1: 32}.get(itemsize, 8)


def _choose_block_rows(R, H, itemsize, traffic_target, vmem_ceiling, min_steps):
    pack = _sublane_pack(itemsize)
    bytes_per_row_io = H * (2 * itemsize)        # input row + output row (same dtype)
    bytes_per_row_f32 = H * 4                    # in-kernel f32 upcast working set

    # Rows from the HBM-traffic target (amortize per-grid-step overhead).
    rows = max(pack, traffic_target // bytes_per_row_io)
    # Rows that fit the VMEM budget: double-buffered in+out + f32 scratch + headroom.
    vmem_per_row = 2 * bytes_per_row_io + 2 * bytes_per_row_f32
    headroom = 2 * 1024 * 1024
    rows = min(rows, max(pack, (vmem_ceiling - headroom) // vmem_per_row))
    rows = min(rows, _MAX_BLOCK_ROWS)
    rows = max(pack, (rows // pack) * pack)

    # Small inputs: a single full tile (tR == R is always a legal block shape).
    if R <= rows and min_steps <= 1:
        return R
    if min_steps > 1:
        if R <= pack:
            return R                              # can't usefully split
        # Cap so the grid has at least `min_steps` steps (v7x: feed both TCs).
        cap = -(-R // min_steps)                  # cdiv
        cap = max(pack, -(-cap // pack) * pack)   # round up to sublane pack
        rows = min(rows, cap)

    # Prefer a tR (multiple of pack) that divides R -> every step is a full,
    # unmasked store.  Only search nearby candidates.
    lo = max(pack, rows // 2)
    for cand in range(rows, lo - 1, -pack):
        if R % cand == 0:
            return cand
    return rows


# ------------------------------------------------------------------------- wrapper

def gemma_rms_norm(x, weight, eps=1e-6, *, block_rows=None):
    """Pallas equivalent of GemmaRMSNorm.forward.

    x:      [..., H]   (any float dtype)
    weight: [H]
    Returns an array with the same shape and dtype as x.
    """
    orig_shape = x.shape
    H = orig_shape[-1]
    R = 1
    for d in orig_shape[:-1]:
        R *= d

    x2 = x.reshape(R, H)
    # Fold the (1 + weight) add into the wrapper; the kernel just multiplies.
    scale = (1.0 + weight.astype(jnp.float32)).reshape(1, H)

    itemsize = jnp.dtype(x.dtype).itemsize
    gen = _tpu_generation()
    traffic_target, vmem_limit, min_steps = _GEN_PARAMS[gen]

    if block_rows is None:
        tR = _choose_block_rows(R, H, itemsize, traffic_target, vmem_limit, min_steps)
    else:
        tR = min(block_rows, R)

    grid = (pl.cdiv(R, tR),)

    cost = pl.CostEstimate(
        flops=3 * R * H,                                  # square, scale, multiply
        transcendentals=R,                                # one rsqrt per row
        bytes_accessed=2 * R * H * itemsize + H * 4,      # read x, write y, read scale
    )

    out = pl.pallas_call(
        functools.partial(_rmsnorm_kernel, eps=eps),
        out_shape=jax.ShapeDtypeStruct((R, H), x.dtype),
        grid_spec=pltpu.PrefetchScalarGridSpec(
            num_scalar_prefetch=0,
            grid=grid,
            in_specs=[
                pl.BlockSpec((tR, H), lambda i: (i, 0)),   # row tile of x
                pl.BlockSpec((1, H), lambda i: (0, 0)),    # shared (1 + weight)
            ],
            out_specs=pl.BlockSpec((tR, H), lambda i: (i, 0)),
        ),
        compiler_params=pltpu.CompilerParams(
            dimension_semantics=("parallel",),             # rows independent
            vmem_limit_bytes=vmem_limit,
        ),
        cost_estimate=cost,
    )(x2, scale)
    return out.reshape(orig_shape)


# ----------------------------------------------------------------------- reference

def _reference(x, weight, eps=1e-6):
    """Pure-JAX reference mirroring the PyTorch forward."""
    xf = x.astype(jnp.float32)
    ms = jnp.mean(xf * xf, axis=-1, keepdims=True)
    out = xf * jax.lax.rsqrt(ms + eps)
    out = out * (1.0 + weight.astype(jnp.float32))
    return out.astype(x.dtype)


if __name__ == "__main__":
    key = jax.random.PRNGKey(0)
    B, S, H = 2, 8, 256          # lane-dense hidden dim (multiple of 128)
    kx, kw = jax.random.split(key)

    x = jax.random.normal(kx, (B, S, H), dtype=jnp.float32)
    weight = 0.1 * jax.random.normal(kw, (H,), dtype=jnp.float32)

    # f32 path — tight tolerance.
    out = jax.block_until_ready(gemma_rms_norm(x, weight))
    ref = _reference(x, weight)
    assert out.shape == x.shape and out.dtype == x.dtype
    assert jnp.allclose(out, ref, atol=1e-5, rtol=1e-5)

    # bf16 path — exercises the .type_as(x) behaviour (compute in f32, cast back).
    xb = x.astype(jnp.bfloat16)
    outb = jax.block_until_ready(gemma_rms_norm(xb, weight))
    refb = _reference(xb, weight)
    assert outb.dtype == jnp.bfloat16
    assert jnp.allclose(outb.astype(jnp.float32), refb.astype(jnp.float32),
                        atol=2e-2, rtol=2e-2)

    # Larger shape that forces multiple grid steps / tile-divisor selection.
    xl = jax.random.normal(key, (4, 512, H), dtype=jnp.bfloat16)
    outl = jax.block_until_ready(gemma_rms_norm(xl, weight))
    refl = _reference(xl, weight)
    assert jnp.allclose(outl.astype(jnp.float32), refl.astype(jnp.float32),
                        atol=2e-2, rtol=2e-2)

    print("KERNEL_OK")
</pallas_src>

<mosaic_0001>
module attributes {stable_mosaic.version = 11 : i64} {
  func.func @_rmsnorm_kernel(%arg0: i32, %arg1: memref<16x256xf32, #tpu.memory_space<vmem>>, %arg2: memref<1x256xf32, #tpu.memory_space<vmem>>, %arg3: memref<16x256xf32, #tpu.memory_space<vmem>>) attributes {dimension_semantics = [#tpu.dimension_semantics<parallel>], iteration_bounds = array<i64: 1>, scalar_prefetch = 0 : i64, scratch_operands = 0 : i64, tpu.core_type = #tpu.core_type<tc>, window_params = [{transform_indices = @transform_0, window_bounds = array<i64: 16, 256>}, {pipeline_mode = #tpu.pipeline_mode<synchronous>, transform_indices = @transform_1, window_bounds = array<i64: 1, 256>}, {transform_indices = @transform_2, window_bounds = array<i64: 16, 256>}]} {
    %c0 = arith.constant 0 : index
    %c0_0 = arith.constant 0 : index
    %0 = vector.load %arg1[%c0, %c0_0] : memref<16x256xf32, #tpu.memory_space<vmem>>, vector<16x256xf32>
    %1 = arith.mulf %0, %0 : vector<16x256xf32>
    %cst = arith.constant dense<0.000000e+00> : vector<16xf32>
    %2 = vector.multi_reduction <add>, %1, %cst [1] : vector<16x256xf32> to vector<16xf32>
    %3 = vector.shape_cast %2 : vector<16xf32> to vector<16x1xf32>
    %cst_1 = arith.constant 2.560000e+02 : f32
    %4 = vector.broadcast %cst_1 : f32 to vector<16x1xf32>
    %5 = arith.divf %3, %4 : vector<16x1xf32>
    %cst_2 = arith.constant 9.99999997E-7 : f32
    %6 = vector.broadcast %cst_2 : f32 to vector<16x1xf32>
    %7 = arith.addf %5, %6 : vector<16x1xf32>
    %8 = math.rsqrt %7 : vector<16x1xf32>
    %9 = vector.broadcast %8 : vector<16x1xf32> to vector<16x256xf32>
    %10 = arith.mulf %0, %9 : vector<16x256xf32>
    %c0_3 = arith.constant 0 : index
    %c0_4 = arith.constant 0 : index
    %11 = vector.load %arg2[%c0_3, %c0_4] : memref<1x256xf32, #tpu.memory_space<vmem>>, vector<1x256xf32>
    %12 = vector.broadcast %11 : vector<1x256xf32> to vector<16x256xf32>
    %13 = arith.mulf %10, %12 : vector<16x256xf32>
    %c0_5 = arith.constant 0 : index
    %c0_6 = arith.constant 0 : index
    %14 = vector.load %arg3[%c0_5, %c0_6] : memref<16x256xf32, #tpu.memory_space<vmem>>, vector<16x256xf32>
    tpu.vector_store %arg3[%c0_5, %c0_6], %13 {strides = array<i32>} : memref<16x256xf32, #tpu.memory_space<vmem>>, vector<16x256xf32>,
    return
  }
  func.func @transform_0(%arg0: i32) -> (i32, i32) {
    %c0_i32 = arith.constant 0 : i32
    %c0_i32_0 = arith.constant 0 : i32
    return %arg0, %c0_i32 : i32, i32
  }
  func.func @transform_1(%arg0: i32) -> (i32, i32) {
    %c0_i32 = arith.constant 0 : i32
    %c0_i32_0 = arith.constant 0 : i32
    %c0_i32_1 = arith.constant 0 : i32
    return %c0_i32, %c0_i32_0 : i32, i32
  }
  func.func @transform_2(%arg0: i32) -> (i32, i32) {
    %c0_i32 = arith.constant 0 : i32
    %c0_i32_0 = arith.constant 0 : i32
    return %arg0, %c0_i32 : i32, i32
  }
}

</mosaic_0001>

<bundles_post_ra>
// kernel: tpu_custom_call.1
= control target key start
LH: loop header
LB: loop body
LE: loop exit
PB: predicated region body
PF: predicated region fallthrough
CT: control target
= control target key end

     0   :  { %7 = vsyncpa [#allocation3], 0  ;;  %s251_s0 = inlined_call_operand.hbm [shape: f32[16,256], index: 0, kind: input, shape index: {}]   ;;  %s252_s1 = inlined_call_operand.hbm [shape: f32[1,256], index: 1, kind: input, shape index: {}]   ;;  %s253_s2 = inlined_call_operand.hbm [shape: f32[16,256], index: 2, kind: output, shape index: {}]  }
   0x1   :  { %8 = vsyncpa [#allocation6], 0 }
   0x2   :  { %9 = vsyncpa [#allocation4], 0  ;;  %s14_s11 = sshll.u32 %s251_s0, 4  ;;  %s215_s12 = smov [#allocation2]   ;;  %s15_s11 = int_to_ptr.hbm [resolvable:$true] %s14_s11 }
   0x3   :  { %s16_s13 = sshll.u32 %s215_s12, 4  ;;  %s28_s16 = sshll.u32 %s252_s1, 4  ;;  %s17_s13 = int_to_ptr.vmem [resolvable:$true] %s16_s13  ;;  %s29_s16 = int_to_ptr.hbm [resolvable:$true] %s28_s16 }
   0x4   :  { %s216_s17 = smov 256   ;;  %s217_s18 = smov 16  }
   0x5   :  { %22 = dma.hbm_to_vmem [thread:$0]  %s15_s11, 512, %s17_s13, [#allocation3], %s216_s17, %s216_s17, %s217_s18  }
   0x6   :  { %s218_s19 = smov [#allocation5]  }
   0x7   :  { %s30_s20 = sshll.u32 %s218_s19, 4  ;;  %s31_s20 = int_to_ptr.vmem [resolvable:$true] %s30_s20 }
   0x8   :  { %33 = dma.hbm_to_vmem [thread:$0]  %s29_s16, 32, %s31_s20, [#allocation6]  }
   0x9   :  { %209 = dma.done.wait [#allocation3], 512  }
   0xa   :  { %210 = vsyncadd [#allocation3], 4294966784 }
   0xb   :  { %211 = dma.done.wait [#allocation6], 32  }
   0xc   :  { %212 = vsyncadd [#allocation6], 4294967264  ;;  %v42_v0 = vld [vmem:[#allocation2] sm:$0xff]  ;;  %v43_v1 = vld [vmem:[#allocation2 + $0x8] sm:$0xff]  ;;  %v219_v10 = vmov 256.0   ;;  %s220_s0 = smov [#allocation7]  }
   0xd   :  { %v46_v2 = vmul.f32 %v42_v0, %v42_v0  ;;  %v47_v3 = vmul.f32 %v43_v1, %v43_v1  ;;  %v44_v4 = vld [vmem:[#allocation2 + $0x10] sm:$0xff]  ;;  %v45_v5 = vld [vmem:[#allocation2 + $0x18] sm:$0xff]  ;;  %131 = vrcp.f32 %v219_v10  ;;  %v91_v27 = vld [vmem:[#allocation5] sm:$0x3]  ;;  %s109_s1 = sshll.u32 %s220_s0, 4  ;;  %s111_s23 = sshll.u32 %s253_s2, 4  ;;  %s110_s1 = int_to_ptr.vmem [resolvable:$true] %s109_s1  ;;  %s112_s23 = int_to_ptr.hbm [resolvable:$true] %s111_s23 }
   0xe   :  { %v48_v7 = vmul.f32 %v44_v4, %v44_v4  ;;  %v49_v8 = vmul.f32 %v45_v5, %v45_v5  ;;  %v93_v32 = vperm.slane %v91_v27, 0  ;;  %v94_v33 = vperm.slane %v91_v27, 1 }
   0xf   :  { %v50_v6 = vadd.f32 %v47_v3, %v46_v2 }
  0x10   :  { %v53_v9 = vadd.f32 %v49_v8, %v48_v7 }
  0x11   :  { %51 = vadd.xlane.f32.xlu0 %v50_v6 }
  0x13   :  { %v132_v11 = vpop.eup %131 }
  0x14   :  { %v57_v12 = vmul.f32 256.0, %v132_v11  ;;  %vm61_vm0 = vweird.f32 %v132_v11 }
  0x16   :  { %v58_v13 = vsub.f32 1.0, %v57_v12 }
  0x18   :  { %v59_v14 = vmul.f32 %v132_v11, %v58_v13 }
  0x19   :  { %54 = vadd.xlane.f32.xlu0 %v53_v9 }
  0x1a   :  { %v60_v15 = vadd.f32 %v132_v11, %v59_v14 }
  0x1c   :  { %v62_v16 = vsel %vm61_vm0, %v132_v11, %v60_v15 }
  0x84   :  { %v52_v17 = vpop.xlane.xlu0 %51 }
  0x85   :  { %v63_v18 = vmul.f32 %v62_v16, %v52_v17 }
  0x87   :  { %v65_v19 = vadd.f32 1e-06, %v63_v18 }
  0x89   :  { %133 = vrsqrt.f32 %v65_v19  ;;  %vm73_vm2 = vweird.f32 %v65_v19 }
  0x8c   :  { %v55_v20 = vpop.xlane.xlu0 %54 }
  0x8d   :  { %v64_v21 = vmul.f32 %v62_v16, %v55_v20 }
  0x8f   :  { %v134_v22 = vpop.eup %133  ;;  %v66_v23 = vadd.f32 1e-06, %v64_v21 }
  0x90   :  { %v68_v24 = vmul.f32 %v134_v22, %v65_v19  ;;  %vm74_vm1 = vweird.f32 %v134_v22 }
  0x91   :  { %135 = vrsqrt.f32 %v66_v23  ;;  %vm75_vm3 = vmor %vm73_vm2, %vm74_vm1  ;;  %vm83_vm5 = vweird.f32 %v66_v23 }
  0x92   :  { %v69_v25 = vmul.f32 %v134_v22, %v68_v24 }
  0x94   :  { %v70_v26 = vmul.f32 0.5, %v69_v25 }
  0x96   :  { %v71_v28 = vsub.f32 1.5, %v70_v26 }
  0x97   :  { %v136_v29 = vpop.eup %135 }
  0x98   :  { %v72_v30 = vmul.f32 %v134_v22, %v71_v28  ;;  %v78_v31 = vmul.f32 %v136_v29, %v66_v23  ;;  %vm84_vm4 = vweird.f32 %v136_v29 }
  0x99   :  { %vm85_vm6 = vmor %vm83_vm5, %vm84_vm4 }
  0x9a   :  { %v76_v34 = vsel %vm75_vm3, %v134_v22, %v72_v30  ;;  %v79_v35 = vmul.f32 %v136_v29, %v78_v31 }
  0x9b   :  { %v87_v36 = vmul.f32 %v76_v34, %v42_v0  ;;  %v88_v37 = vmul.f32 %v76_v34, %v43_v1 }
  0x9c   :  { %v80_v38 = vmul.f32 0.5, %v79_v35 }
  0x9d   :  { %v97_v39 = vmul.f32 %v93_v32, %v87_v36  ;;  %v98_v40 = vmul.f32 %v94_v33, %v88_v37 }
  0x9e   :  { %v81_v41 = vsub.f32 1.5, %v80_v38 }
  0x9f   :  { %101 = vst [vmem:[#allocation7] sm:$0xff] %v97_v39 }
  0xa0   :  { %102 = vst [vmem:[#allocation7 + $0x8] sm:$0xff] %v98_v40  ;;  %v82_v42 = vmul.f32 %v136_v29, %v81_v41 }
  0xa2   :  { %v86_v43 = vsel %vm85_vm6, %v136_v29, %v82_v42 }
  0xa3   :  { %v89_v44 = vmul.f32 %v86_v43, %v44_v4  ;;  %v90_v45 = vmul.f32 %v86_v43, %v45_v5 }
  0xa5   :  { %v99_v46 = vmul.f32 %v93_v32, %v89_v44  ;;  %v100_v47 = vmul.f32 %v94_v33, %v90_v45 }
  0xa7   :  { %103 = vst [vmem:[#allocation7 + $0x10] sm:$0xff] %v99_v46 }
  0xa8   :  { %104 = vst [vmem:[#allocation7 + $0x18] sm:$0xff] %v100_v47 }
  0xa9   :  { %117 = dma.vmem_to_hbm [thread:$0]  %s110_s1, 512, %s112_s23, [#allocation4], %s216_s17, %s216_s17, %s217_s18  }
  0xaa   :  { %213 = dma.done.wait [#allocation4], 512  }
  0xab   :  { %214 = vsyncadd [#allocation4], 4294966784 }
  0xac   :  { %122 = vsyncpa [#allocation3], 1 }
  0xad   :  { %123 = vsyncpa [#allocation6], 1 }
  0xae   :  { %124 = vsyncpa [#allocation4], 1 }

</bundles_post_ra>
